<compile_context>
chip_gen: v7x
topology: tpu7x:2x2x1
jax: 0.10.0
libtpu: 0.0.40
codegen_flags: <defaults>
</compile_context>

<pallas_src>
from functools import partial
from typing import NamedTuple, Tuple

import jax
import jax.numpy as jnp
from jax.experimental import pallas as pl
from jax.experimental.pallas import tpu as pltpu


class SparseMat(NamedTuple):
    """Minimal JAX-side stand-in for the PyTorch SparseMat container."""
    values: jax.Array          # [nnz, feat]
    indices: jax.Array         # [2, nnz]  (row, col) indices — passed through
    cam_per_pts: jax.Array     # passed through
    pts_per_cam: jax.Array     # passed through
    shape: Tuple[int, ...]     # dense logical shape — passed through


# ----------------------------- Pallas kernel ------------------------------ #

def _sigmoid_kernel(x_ref, o_ref):
    # Upcast to f32, compute sigmoid with a single EUP transcendental
    # (tanh) plus a VPU fma, downcast only at the store.
    x = x_ref[...].astype(jnp.float32)
    y = 0.5 * (jnp.tanh(0.5 * x) + 1.0)
    o_ref[...] = y.astype(o_ref.dtype)


@partial(jax.jit,
         static_argnames=("lane_width", "rows_per_block", "vmem_limit_bytes"))
def sigmoid_values(values: jax.Array,
                   *,
                   lane_width: int = 512,
                   rows_per_block: int = 2048,
                   vmem_limit_bytes: int = 40 * 1024 * 1024) -> jax.Array:
    """Elementwise sigmoid over `values` (any shape) via a lane-dense Pallas kernel."""
    orig_shape = values.shape
    dtype = values.dtype
    n = values.size

    # Sublane packing multiple per dtype: 8 (f32), 16 (bf16/f16), 32 (int8/fp8).
    itemsize = jnp.dtype(dtype).itemsize
    sublane_mult = max(8, 32 // max(itemsize, 1))
    chunk = sublane_mult * lane_width          # smallest aligned [rows, lane] slab

    # Tiny-input fast path: launch overhead dominates, let XLA fuse it.
    if n < chunk:
        return jax.nn.sigmoid(values.astype(jnp.float32)).astype(dtype)

    flat = values.reshape(-1)
    n_main = (n // chunk) * chunk              # aligned prefix handled by Pallas
    rows = n_main // lane_width                # multiple of sublane_mult by construction
    x2d = flat[:n_main].reshape(rows, lane_width)

    # Multi-MiB tiles, rounded to the sublane multiple.
    block_rows = min(rows_per_block, rows)
    block_rows = max(sublane_mult, (block_rows // sublane_mult) * sublane_mult)
    grid = (pl.cdiv(rows, block_rows),)

    out2d = pl.pallas_call(
        _sigmoid_kernel,
        out_shape=jax.ShapeDtypeStruct((rows, lane_width), dtype),
        grid_spec=pltpu.PrefetchScalarGridSpec(
            num_scalar_prefetch=0,
            grid=grid,
            in_specs=[pl.BlockSpec((block_rows, lane_width), lambda i: (i, 0))],
            out_specs=pl.BlockSpec((block_rows, lane_width), lambda i: (i, 0)),
        ),
        compiler_params=pltpu.CompilerParams(
            dimension_semantics=("parallel",),
            vmem_limit_bytes=vmem_limit_bytes,
        ),
    )(x2d)

    out_main = out2d.reshape(-1)
    if n_main == n:
        return out_main.reshape(orig_shape)

    # Ragged tail (< chunk elements): plain jnp, fused by XLA, no HBM padding.
    tail = flat[n_main:]
    out_tail = jax.nn.sigmoid(tail.astype(jnp.float32)).astype(dtype)
    return jnp.concatenate([out_main, out_tail]).reshape(orig_shape)


# ------------------------- Module-equivalent wrapper ----------------------- #

def sigmoid_score_layer(x: SparseMat) -> SparseMat:
    """Forward pass of SigmoidScoreLayer: sigmoid on values, metadata passthrough."""
    new_features = sigmoid_values(x.values)
    return SparseMat(new_features, x.indices, x.cam_per_pts, x.pts_per_cam, x.shape)


# ---------------------------------- Main ----------------------------------- #

if __name__ == "__main__":
    key = jax.random.PRNGKey(0)
    k_vals, k_idx = jax.random.split(key)

    # Small synthetic SparseMat: 520 nonzeros x 16 features = 8320 values.
    # 8192 of them go through the Pallas kernel (aligned prefix), the remaining
    # 128 exercise the jnp tail path.
    nnz, feat = 520, 16
    n_cams, n_pts = 4, 8

    values = jax.random.normal(k_vals, (nnz, feat), dtype=jnp.float32)
    indices = jax.random.randint(k_idx, (2, nnz), 0, n_pts, dtype=jnp.int32)
    cam_per_pts = jnp.full((n_pts, 1), nnz // n_pts, dtype=jnp.int32)
    pts_per_cam = jnp.full((n_cams, 1), nnz // n_cams, dtype=jnp.int32)
    dense_shape = (n_cams, n_pts, feat)

    x = SparseMat(values, indices, cam_per_pts, pts_per_cam, dense_shape)

    out = sigmoid_score_layer(x)
    jax.block_until_ready(out.values)

    # Correctness vs. pure-JAX reference (exact f32 sigmoid, tight tolerance).
    ref = jax.nn.sigmoid(values)
    assert out.values.shape == values.shape and out.values.dtype == values.dtype
    assert jnp.allclose(out.values, ref, atol=1e-5, rtol=1e-5), "mismatch vs reference"
    # Metadata must pass through unchanged.
    assert out.indices is indices and out.shape == dense_shape

    print("KERNEL_OK")
</pallas_src>

<mosaic_0001>
module attributes {stable_mosaic.version = 11 : i64} {
  func.func @_sigmoid_kernel(%arg0: i32, %arg1: memref<16x512xf32, #tpu.memory_space<vmem>>, %arg2: memref<16x512xf32, #tpu.memory_space<vmem>>) attributes {dimension_semantics = [#tpu.dimension_semantics<parallel>], iteration_bounds = array<i64: 1>, scalar_prefetch = 0 : i64, scratch_operands = 0 : i64, tpu.core_type = #tpu.core_type<tc>, window_params = [{transform_indices = @transform_0, window_bounds = array<i64: 16, 512>}, {transform_indices = @transform_1, window_bounds = array<i64: 16, 512>}]} {
    %c0 = arith.constant 0 : index
    %c0_0 = arith.constant 0 : index
    %0 = vector.load %arg1[%c0, %c0_0] : memref<16x512xf32, #tpu.memory_space<vmem>>, vector<16x512xf32>
    %cst = arith.constant 5.000000e-01 : f32
    %1 = vector.broadcast %cst : f32 to vector<16x512xf32>
    %2 = arith.mulf %1, %0 : vector<16x512xf32>
    %3 = math.tanh %2 : vector<16x512xf32>
    %cst_1 = arith.constant 1.000000e+00 : f32
    %4 = vector.broadcast %cst_1 : f32 to vector<16x512xf32>
    %5 = arith.addf %3, %4 : vector<16x512xf32>
    %cst_2 = arith.constant 5.000000e-01 : f32
    %6 = vector.broadcast %cst_2 : f32 to vector<16x512xf32>
    %7 = arith.mulf %6, %5 : vector<16x512xf32>
    %c0_3 = arith.constant 0 : index
    %c0_4 = arith.constant 0 : index
    %8 = vector.load %arg2[%c0_3, %c0_4] : memref<16x512xf32, #tpu.memory_space<vmem>>, vector<16x512xf32>
    tpu.vector_store %arg2[%c0_3, %c0_4], %7 {strides = array<i32>} : memref<16x512xf32, #tpu.memory_space<vmem>>, vector<16x512xf32>,
    return
  }
  func.func @transform_0(%arg0: i32) -> (i32, i32) {
    %c0_i32 = arith.constant 0 : i32
    %c0_i32_0 = arith.constant 0 : i32
    return %arg0, %c0_i32 : i32, i32
  }
  func.func @transform_1(%arg0: i32) -> (i32, i32) {
    %c0_i32 = arith.constant 0 : i32
    %c0_i32_0 = arith.constant 0 : i32
    return %arg0, %c0_i32 : i32, i32
  }
}

</mosaic_0001>

<bundles_post_ra>
// kernel: sigmoid_values.1
= control target key start
LH: loop header
LB: loop body
LE: loop exit
PB: predicated region body
PF: predicated region fallthrough
CT: control target
= control target key end

     0   :  { %s134_s0 = inlined_call_operand.vmem [shape: f32[16,512], index: 0, kind: input, shape index: {}]   ;;  %s135_s1 = inlined_call_operand.vmem [shape: f32[16,512], index: 1, kind: output, shape index: {}]  }
   0x1   :  { %v8_v0 = vld [vmem:[%s134_s0] sm:$0xff]  ;;  %v9_v1 = vld [vmem:[%s134_s0 + $0x8] sm:$0xff]  ;;  %v10_v2 = vld [vmem:[%s134_s0 + $0x10] sm:$0xff] }
   0x2   :  { %v16_v3 = vmul.f32 0.5, %v8_v0  ;;  %v17_v4 = vmul.f32 0.5, %v9_v1  ;;  %v18_v5 = vmul.f32 0.5, %v10_v2  ;;  %v11_v6 = vld [vmem:[%s134_s0 + $0x18] sm:$0xff]  ;;  %v12_v7 = vld [vmem:[%s134_s0 + $0x20] sm:$0xff]  ;;  %v13_v8 = vld [vmem:[%s134_s0 + $0x28] sm:$0xff] }
   0x3   :  { %v19_v9 = vmul.f32 0.5, %v11_v6  ;;  %v14_v10 = vld [vmem:[%s134_s0 + $0x30] sm:$0xff]  ;;  %v20_v11 = vmul.f32 0.5, %v12_v7  ;;  %v15_v12 = vld [vmem:[%s134_s0 + $0x38] sm:$0xff]  ;;  %v21_v13 = vmul.f32 0.5, %v13_v8 }
   0x4   :  { %60 = vtanh.f32 %v16_v3  ;;  %v22_v14 = vmul.f32 0.5, %v14_v10  ;;  %v23_v15 = vmul.f32 0.5, %v15_v12 }
   0x5   :  { %62 = vtanh.f32 %v17_v4 }
   0x6   :  { %64 = vtanh.f32 %v18_v5 }
   0x7   :  { %66 = vtanh.f32 %v19_v9 }
   0x8   :  { %68 = vtanh.f32 %v20_v11 }
   0x9   :  { %70 = vtanh.f32 %v21_v13 }
   0xa   :  { %72 = vtanh.f32 %v22_v14 }
   0xb   :  { %74 = vtanh.f32 %v23_v15 }
   0xe   :  { %v61_v16 = vpop.eup %60 }
   0xf   :  { %v63_v17 = vpop.eup %62  ;;  %v32_v18 = vadd.f32 1.0, %v61_v16 }
  0x10   :  { %v65_v19 = vpop.eup %64  ;;  %v33_v20 = vadd.f32 1.0, %v63_v17 }
  0x11   :  { %v67_v21 = vpop.eup %66  ;;  %v40_v22 = vmul.f32 0.5, %v32_v18  ;;  %v34_v23 = vadd.f32 1.0, %v65_v19 }
  0x12   :  { %v69_v24 = vpop.eup %68  ;;  %v41_v25 = vmul.f32 0.5, %v33_v20  ;;  %v35_v26 = vadd.f32 1.0, %v67_v21 }
  0x13   :  { %v71_v27 = vpop.eup %70  ;;  %48 = vst [vmem:[%s135_s1] sm:$0xff] %v40_v22  ;;  %v42_v28 = vmul.f32 0.5, %v34_v23  ;;  %v36_v29 = vadd.f32 1.0, %v69_v24 }
  0x14   :  { %v73_v30 = vpop.eup %72  ;;  %49 = vst [vmem:[%s135_s1 + $0x8] sm:$0xff] %v41_v25  ;;  %v43_v31 = vmul.f32 0.5, %v35_v26  ;;  %v37_v32 = vadd.f32 1.0, %v71_v27 }
  0x15   :  { %v75_v33 = vpop.eup %74  ;;  %50 = vst [vmem:[%s135_s1 + $0x10] sm:$0xff] %v42_v28  ;;  %v44_v34 = vmul.f32 0.5, %v36_v29  ;;  %v38_v35 = vadd.f32 1.0, %v73_v30 }
  0x16   :  { %51 = vst [vmem:[%s135_s1 + $0x18] sm:$0xff] %v43_v31  ;;  %v45_v36 = vmul.f32 0.5, %v37_v32  ;;  %v39_v37 = vadd.f32 1.0, %v75_v33 }
  0x17   :  { %52 = vst [vmem:[%s135_s1 + $0x20] sm:$0xff] %v44_v34  ;;  %v46_v38 = vmul.f32 0.5, %v38_v35 }
  0x18   :  { %53 = vst [vmem:[%s135_s1 + $0x28] sm:$0xff] %v45_v36  ;;  %v47_v39 = vmul.f32 0.5, %v39_v37 }
  0x19   :  { %54 = vst [vmem:[%s135_s1 + $0x30] sm:$0xff] %v46_v38 }
  0x1a   :  { %55 = vst [vmem:[%s135_s1 + $0x38] sm:$0xff] %v47_v39 }

</bundles_post_ra>
